<compile_context>
chip_gen: v7x
topology: tpu7x:2x2x1
jax: 0.10.0
libtpu: 0.0.40
codegen_flags: <defaults>
</compile_context>

<pallas_src>
import functools

import jax
import jax.numpy as jnp
from jax import lax
from jax.experimental import pallas as pl
from jax.experimental.pallas import tpu as pltpu

_BN_EPS = 1e-5
_BIG = 1e30


def _round_up(v, m):
    return ((v + m - 1) // m) * m


def _vmem_budget():
    """(physical VMEM bytes, vmem_limit_bytes for CompilerParams), derived from the chip."""
    cap = 64 * 1024 * 1024          # conservative fallback = v7x per-TensorCore capacity
    try:
        info = pltpu.get_tpu_info()
        cap = int(getattr(info, "vmem_capacity_bytes", cap) or cap)
    except Exception:
        pass
    limit = min((cap * 3) // 4, 96 * 1024 * 1024)   # 48 MiB on v7x, 96 MiB on v5e/v6e
    return cap, limit


def _pick_tile_n(n, n_sub_pad, c_out, c_aug, coord_pad, vmem_cap, max_tile_n=None):
    """Row-tile size, accounting for double-buffered resident blocks + live temporaries."""
    resident = 2 * (n_sub_pad * c_aug * 2          # h_sub_aug (bf16), double-buffered
                    + coord_pad * n_sub_pad * 4    # pos_sub_aug^T (f32)
                    + c_out * c_out * 2            # folded w2' (bf16)
                    + c_out * 4)                   # folded b2'
    per_row = (2 * (2 * c_out * 4 + coord_pad * 4)   # double-buffered x / out / pos tiles
               + 4 * n_sub_pad * 4                   # d, d_work, inv_d, w_sel live temps
               + c_aug * 4                           # interp
               + 3 * c_out * 4)                      # y / h / x_interp
    usable = max(int(vmem_cap * 0.55) - resident, 8 * per_row)
    cap_rows = usable // per_row
    hw_max = 1024 if vmem_cap >= (96 << 20) else 512  # bigger tiles on 128-MiB parts
    if max_tile_n is not None:
        hw_max = max_tile_n
    t = min(hw_max, cap_rows, _round_up(n, 8))
    return max(8, (t // 8) * 8)


def _mlp(x, w, b, gamma, beta):
    """Linear -> BatchNorm1d (training-mode batch stats over all rows of x) -> ReLU."""
    y = jnp.dot(x, w, preferred_element_type=jnp.float32) + b
    mean = jnp.mean(y, axis=0, keepdims=True)
    var = jnp.mean((y - mean) ** 2, axis=0, keepdims=True)
    y = (y - mean) * lax.rsqrt(var + _BN_EPS) * gamma + beta
    return jnp.maximum(y, 0.0)


# --------------------------------------------------------------------------------------
# Kernel 1: mlp_sub over the (small, resident) sub-sampled set, with an appended ones
# column so a single MXU matmul later produces both the interpolation numerator and the
# per-row weight sum. (Lane padding / bf16 cast happen once in the wrapper.)
# --------------------------------------------------------------------------------------
def _mlp_sub_kernel(x_sub_ref, w1_ref, b1_ref, g1_ref, be1_ref, out_ref):
    h = _mlp(x_sub_ref[...], w1_ref[...], b1_ref[...], g1_ref[...], be1_ref[...])
    c_out = h.shape[1]
    out_ref[:, :c_out] = h
    out_ref[:, c_out:] = jnp.ones((h.shape[0], 1), jnp.float32)


# --------------------------------------------------------------------------------------
# Kernel 2: shifted second-moment statistics of z = x @ w2 (no bias). Zero-padded rows
# contribute exactly zero, so no masking is needed; BN folding happens in the wrapper.
# --------------------------------------------------------------------------------------
def _bn2_stats_kernel(x_ref, w2_ref, stats_ref):
    @pl.when(pl.program_id(0) == 0)
    def _():
        stats_ref[...] = jnp.zeros_like(stats_ref)

    z = jnp.dot(x_ref[...], w2_ref[...], preferred_element_type=jnp.float32)
    stats_ref[0:1, :] += jnp.sum(z, axis=0, keepdims=True)       # sum(z)
    stats_ref[1:2, :] += jnp.sum(z * z, axis=0, keepdims=True)   # sum(z^2)


# --------------------------------------------------------------------------------------
# Kernel 3: fused distance / 3-NN selection / inverse-distance interpolation / mlp / add,
# tiled over the high-resolution point axis.
# --------------------------------------------------------------------------------------
def _transition_up_kernel(x_ref, pos_aug_ref, pos_sub_aug_t_ref, h_sub_aug_ref,
                          w2_ref, b2_ref, out_ref, *, k):
    c_out = w2_ref.shape[1]

    # ---- mlp(x): BN2 folded into (w2', b2') -> Linear + ReLU; bf16 MXU, f32 accumulate ----
    x_bf = x_ref[...].astype(jnp.bfloat16)
    y = jnp.dot(x_bf, w2_ref[...], preferred_element_type=jnp.float32) + b2_ref[...]
    h = jnp.maximum(y, 0.0)

    # ---- pairwise squared distances: single f32 MXU matmul on augmented coordinates ----
    # pos_aug = [-2p | |p|^2 | 1 | 0...], pos_sub_aug^T = [q ; 1 ; |q|^2 ; 0...]
    d = jnp.maximum(
        jnp.dot(pos_aug_ref[...], pos_sub_aug_t_ref[...],
                preferred_element_type=jnp.float32),
        0.0)                                                  # [TILE_N, N_sub_pad]

    # ---- k nearest per row: mask all row minima each round (no argmin / tie-break) ----
    d_work = d
    for _ in range(k):
        dmin = jnp.min(d_work, axis=1, keepdims=True)
        d_work = jnp.where(d_work <= dmin, _BIG, d_work)

    # Selected columns are exactly those whose d_work changed; padded N_sub columns
    # (d = +BIG, never a row minimum) therefore get an exactly-zero weight.
    inv_d = pl.reciprocal(jnp.maximum(d, 1e-16), approx=True)
    w_sel = jnp.where(d_work != d, inv_d, 0.0).astype(jnp.bfloat16)

    # One bf16 MXU matmul gives the weighted feature sum AND (ones column) the weight sum.
    interp = jnp.dot(w_sel, h_sub_aug_ref[...], preferred_element_type=jnp.float32)
    x_interp = interp[:, :c_out] * pl.reciprocal(interp[:, c_out:c_out + 1], approx=True)

    out_ref[...] = h + x_interp


# --------------------------------------------------------------------------------------
# Wrapper
# --------------------------------------------------------------------------------------
def transition_up(x, x_sub, pos, pos_sub, params, *, max_tile_n=None):
    n, c_out = x.shape
    n_sub = x_sub.shape[0]
    pdim = pos.shape[1]
    k = min(3, n_sub)   # PyTorch knn_interpolate uses min(k, n_sub) neighbours

    vmem_cap, vmem_limit = _vmem_budget()

    n_sub_pad = _round_up(n_sub, 128)            # lane-dense [TILE_N, N_sub] ops
    c_aug = _round_up(c_out + 1, 128)            # lane-dense interp matmul output
    coord_pad = max(8, _round_up(pdim + 2, 8))   # aligned MXU contraction for distances

    # ---- 1) mlp_sub (hoisted: computed once, reused by every row tile) ----
    h_sub_aug = pl.pallas_call(
        _mlp_sub_kernel,
        out_shape=jax.ShapeDtypeStruct((n_sub, c_out + 1), jnp.float32),
        in_specs=[pl.BlockSpec(memory_space=pltpu.MemorySpace.VMEM)] * 5,
        out_specs=pl.BlockSpec(memory_space=pltpu.MemorySpace.VMEM),
    )(x_sub, params["w1"], params["b1"], params["g1"], params["be1"])
    # Lane-pad to [N_sub_pad, C_aug]; padded rows are all-zero (including the ones column)
    # so they contribute nothing, and bf16 halves the resident footprint / MXU traffic.
    h_sub_aug = jnp.pad(
        h_sub_aug, ((0, n_sub_pad - n_sub), (0, c_aug - (c_out + 1)))
    ).astype(jnp.bfloat16)

    # ---- 2) BN2 statistics: streaming pass over x with its own large row tile ----
    tile_s = min(1024, _round_up(n, 8))
    n_pad_s = _round_up(n, tile_s)
    x_s = jnp.pad(x, ((0, n_pad_s - n), (0, 0))) if n_pad_s != n else x
    stats = pl.pallas_call(
        _bn2_stats_kernel,
        out_shape=jax.ShapeDtypeStruct((2, c_out), jnp.float32),
        grid=(n_pad_s // tile_s,),
        in_specs=[
            pl.BlockSpec((tile_s, c_out), lambda i: (i, 0)),
            pl.BlockSpec((c_out, c_out), lambda i: (0, 0)),
        ],
        out_specs=pl.BlockSpec((2, c_out), lambda i: (0, 0)),
        compiler_params=pltpu.CompilerParams(
            dimension_semantics=("arbitrary",), vmem_limit_bytes=vmem_limit),
    )(x_s, params["w2"])

    # Fold BN2 into the linear:  BN(x@w2 + b2) = x @ (w2*scale) + (be2 - mean(z)*scale),
    # where z = x@w2, scale = g2 / sqrt(var(z) + eps)   (b2 cancels analytically).
    inv_n = 1.0 / n
    mean_z = stats[0:1] * inv_n
    var_z = jnp.maximum(stats[1:2] * inv_n - mean_z * mean_z, 0.0)
    scale = params["g2"] * lax.rsqrt(var_z + _BN_EPS)            # [1, c_out]
    w2p = (params["w2"] * scale).astype(jnp.bfloat16)            # [c_out, c_out]
    b2p = params["be2"] - mean_z * scale                         # [1, c_out] f32

    # ---- tiling / padding over the high-resolution point axis ----
    tile_n = _pick_tile_n(n, n_sub_pad, c_out, c_aug, coord_pad, vmem_cap, max_tile_n)
    n_pad = _round_up(n, tile_n)
    grid = (n_pad // tile_n,)

    x_p = jnp.pad(x, ((0, n_pad - n), (0, 0))) if n_pad != n else x

    # Augmented coordinates: d = relu(pos_aug @ pos_sub_aug^T) in a single MXU op.
    psq = jnp.sum(pos * pos, axis=1, keepdims=True)
    pos_aug = jnp.concatenate([-2.0 * pos, psq, jnp.ones((n, 1), jnp.float32)], axis=1)
    pos_aug = jnp.pad(pos_aug, ((0, n_pad - n), (0, coord_pad - (pdim + 2))))

    qsq = jnp.sum(pos_sub * pos_sub, axis=1, keepdims=True)
    pos_sub_aug = jnp.concatenate(
        [pos_sub, jnp.ones((n_sub, 1), jnp.float32), qsq], axis=1)
    pos_sub_aug = jnp.pad(pos_sub_aug,
                          ((0, n_sub_pad - n_sub), (0, coord_pad - (pdim + 2))))
    if n_sub_pad != n_sub:
        # Padded sub columns must never be selected: force their distance to +BIG.
        pos_sub_aug = pos_sub_aug.at[n_sub:, pdim + 1].set(_BIG)
    pos_sub_aug_t = pos_sub_aug.T                                # [coord_pad, n_sub_pad]

    # ---- 3) fused kNN-interpolate + mlp + add, row-tiled and megacore-parallel ----
    out = pl.pallas_call(
        functools.partial(_transition_up_kernel, k=k),
        out_shape=jax.ShapeDtypeStruct((n_pad, c_out), jnp.float32),
        grid=grid,
        in_specs=[
            pl.BlockSpec((tile_n, c_out), lambda i: (i, 0)),            # x tile
            pl.BlockSpec((tile_n, coord_pad), lambda i: (i, 0)),        # pos_aug tile
            pl.BlockSpec((coord_pad, n_sub_pad), lambda i: (0, 0)),     # pos_sub_aug^T
            pl.BlockSpec((n_sub_pad, c_aug), lambda i: (0, 0)),         # h_sub | 1 (bf16)
            pl.BlockSpec((c_out, c_out), lambda i: (0, 0)),             # folded w2' (bf16)
            pl.BlockSpec((1, c_out), lambda i: (0, 0)),                 # folded b2'
        ],
        out_specs=pl.BlockSpec((tile_n, c_out), lambda i: (i, 0)),
        compiler_params=pltpu.CompilerParams(
            dimension_semantics=("parallel",), vmem_limit_bytes=vmem_limit),
    )(x_p, pos_aug, pos_sub_aug_t, h_sub_aug, w2p, b2p)

    return out[:n]


# --------------------------------------------------------------------------------------
# Pure-JAX reference matching the PyTorch forward (single batch)
# --------------------------------------------------------------------------------------
def _reference(x, x_sub, pos, pos_sub, params):
    def mlp(v, w, b, g, be):
        y = v @ w + b
        m = y.mean(0, keepdims=True)
        var = ((y - m) ** 2).mean(0, keepdims=True)
        y = (y - m) * lax.rsqrt(var + _BN_EPS) * g + be
        return jnp.maximum(y, 0.0)

    h_sub = mlp(x_sub, params["w1"], params["b1"], params["g1"], params["be1"])
    d = jnp.sum((pos[:, None, :] - pos_sub[None, :, :]) ** 2, axis=-1)
    idx = jnp.argsort(d, axis=1)[:, :3]
    d3 = jnp.take_along_axis(d, idx, axis=1)
    w = 1.0 / jnp.maximum(d3, 1e-16)
    feats = h_sub[idx]                                   # [N, 3, C_out]
    x_interp = (feats * w[..., None]).sum(1) / w.sum(1, keepdims=True)
    h = mlp(x, params["w2"], params["b2"], params["g2"], params["be2"])
    return h + x_interp


if __name__ == "__main__":
    key = jax.random.PRNGKey(0)
    n, n_sub = 380, 96          # n not a multiple of the tile -> exercises row padding;
    c_in, c_out = 32, 64        # n_sub=96 -> exercises N_sub lane padding to 128
    ks = jax.random.split(key, 10)

    x = jax.random.normal(ks[0], (n, c_out), jnp.float32)         # features at high res
    x_sub = jax.random.normal(ks[1], (n_sub, c_in), jnp.float32)  # features at sub res
    pos = jax.random.normal(ks[2], (n, 3), jnp.float32)
    pos_sub = jax.random.normal(ks[3], (n_sub, 3), jnp.float32)

    def lin_init(k, fan_in, fan_out):
        bound = 1.0 / float(fan_in) ** 0.5
        kw, kb = jax.random.split(k)
        w = jax.random.uniform(kw, (fan_in, fan_out), jnp.float32, -bound, bound)
        b = jax.random.uniform(kb, (1, fan_out), jnp.float32, -bound, bound)
        return w, b

    w1, b1 = lin_init(ks[4], c_in, c_out)     # mlp_sub: Linear(in_ch, out_ch)
    w2, b2 = lin_init(ks[5], c_out, c_out)    # mlp:     Linear(out_ch, out_ch)
    params = dict(
        w1=w1, b1=b1,
        g1=jax.random.uniform(ks[6], (1, c_out), jnp.float32, 0.5, 1.5),
        be1=0.1 * jax.random.normal(ks[7], (1, c_out), jnp.float32),
        w2=w2, b2=b2,
        g2=jax.random.uniform(ks[8], (1, c_out), jnp.float32, 0.5, 1.5),
        be2=0.1 * jax.random.normal(ks[9], (1, c_out), jnp.float32),
    )

    # max_tile_n=128 forces a multi-tile grid + padded rows at this small demo size.
    out = jax.block_until_ready(
        transition_up(x, x_sub, pos, pos_sub, params, max_tile_n=128))
    ref = _reference(x, x_sub, pos, pos_sub, params)
    assert out.shape == (n, c_out)
    err = float(jnp.max(jnp.abs(out - ref)))
    # Tolerance covers the bf16 MXU operands (x/w2', w_sel/h_sub), the EUP approximate
    # reciprocals (1/d^2 weights and the normalization), and the |p|^2+|q|^2-2p.q distance
    # form vs the f32 reference; genuine bugs show up orders of magnitude larger.
    assert jnp.allclose(out, ref, rtol=3e-2, atol=3e-2), err
    print("KERNEL_OK")
</pallas_src>

<mosaic_0001>
module attributes {stable_mosaic.version = 11 : i64} {
  func.func @_mlp_sub_kernel(%arg0: memref<96x32xf32, #tpu.memory_space<vmem>>, %arg1: memref<32x64xf32, #tpu.memory_space<vmem>>, %arg2: memref<1x64xf32, #tpu.memory_space<vmem>>, %arg3: memref<1x64xf32, #tpu.memory_space<vmem>>, %arg4: memref<1x64xf32, #tpu.memory_space<vmem>>, %arg5: memref<96x65xf32, #tpu.memory_space<vmem>>) attributes {dimension_semantics = [], scalar_prefetch = 0 : i64, scratch_operands = 0 : i64, tpu.core_type = #tpu.core_type<tc>} {
    %c0 = arith.constant 0 : index
    %c0_0 = arith.constant 0 : index
    %0 = vector.load %arg0[%c0, %c0_0] : memref<96x32xf32, #tpu.memory_space<vmem>>, vector<96x32xf32>
    %c0_1 = arith.constant 0 : index
    %c0_2 = arith.constant 0 : index
    %1 = vector.load %arg1[%c0_1, %c0_2] : memref<32x64xf32, #tpu.memory_space<vmem>>, vector<32x64xf32>
    %c0_3 = arith.constant 0 : index
    %c0_4 = arith.constant 0 : index
    %2 = vector.load %arg2[%c0_3, %c0_4] : memref<1x64xf32, #tpu.memory_space<vmem>>, vector<1x64xf32>
    %c0_5 = arith.constant 0 : index
    %c0_6 = arith.constant 0 : index
    %3 = vector.load %arg3[%c0_5, %c0_6] : memref<1x64xf32, #tpu.memory_space<vmem>>, vector<1x64xf32>
    %c0_7 = arith.constant 0 : index
    %c0_8 = arith.constant 0 : index
    %4 = vector.load %arg4[%c0_7, %c0_8] : memref<1x64xf32, #tpu.memory_space<vmem>>, vector<1x64xf32>
    %cst = arith.constant dense<0.000000e+00> : vector<96x64xf32>
    %5 = tpu.matmul %0, %1, %cst {dimension_numbers = #tpu.dot_dimension_numbers<[1], [0], [0], [1], [0, 0, 1, 1], [], []>} : vector<96x32xf32>, vector<32x64xf32>, vector<96x64xf32> -> vector<96x64xf32>
    %6 = vector.broadcast %2 : vector<1x64xf32> to vector<96x64xf32>
    %7 = arith.addf %5, %6 : vector<96x64xf32>
    %cst_9 = arith.constant dense<0.000000e+00> : vector<64xf32>
    %8 = vector.multi_reduction <add>, %7, %cst_9 [0] : vector<96x64xf32> to vector<64xf32>
    %9 = vector.shape_cast %8 : vector<64xf32> to vector<1x64xf32>
    %cst_10 = arith.constant 9.600000e+01 : f32
    %10 = vector.broadcast %cst_10 : f32 to vector<1x64xf32>
    %11 = arith.divf %9, %10 : vector<1x64xf32>
    %12 = vector.broadcast %11 : vector<1x64xf32> to vector<96x64xf32>
    %13 = arith.subf %7, %12 : vector<96x64xf32>
    %14 = arith.mulf %13, %13 : vector<96x64xf32>
    %cst_11 = arith.constant dense<0.000000e+00> : vector<64xf32>
    %15 = vector.multi_reduction <add>, %14, %cst_11 [0] : vector<96x64xf32> to vector<64xf32>
    %16 = vector.shape_cast %15 : vector<64xf32> to vector<1x64xf32>
    %cst_12 = arith.constant 9.600000e+01 : f32
    %17 = vector.broadcast %cst_12 : f32 to vector<1x64xf32>
    %18 = arith.divf %16, %17 : vector<1x64xf32>
    %19 = vector.broadcast %11 : vector<1x64xf32> to vector<96x64xf32>
    %20 = arith.subf %7, %19 : vector<96x64xf32>
    %cst_13 = arith.constant 9.99999974E-6 : f32
    %21 = vector.broadcast %cst_13 : f32 to vector<1x64xf32>
    %22 = arith.addf %18, %21 : vector<1x64xf32>
    %23 = math.rsqrt %22 : vector<1x64xf32>
    %24 = vector.broadcast %23 : vector<1x64xf32> to vector<96x64xf32>
    %25 = arith.mulf %20, %24 : vector<96x64xf32>
    %26 = vector.broadcast %3 : vector<1x64xf32> to vector<96x64xf32>
    %27 = arith.mulf %25, %26 : vector<96x64xf32>
    %28 = vector.broadcast %4 : vector<1x64xf32> to vector<96x64xf32>
    %29 = arith.addf %27, %28 : vector<96x64xf32>
    %cst_14 = arith.constant 0.000000e+00 : f32
    %30 = vector.broadcast %cst_14 : f32 to vector<96x64xf32>
    %31 = arith.maximumf %29, %30 : vector<96x64xf32>
    %c0_15 = arith.constant 0 : index
    %c0_16 = arith.constant 0 : index
    %32 = vector.load %arg5[%c0_15, %c0_16] : memref<96x65xf32, #tpu.memory_space<vmem>>, vector<96x64xf32>
    tpu.vector_store %arg5[%c0_15, %c0_16], %31 {strides = array<i32>} : memref<96x65xf32, #tpu.memory_space<vmem>>, vector<96x64xf32>,
    %cst_17 = arith.constant 1.000000e+00 : f32
    %33 = vector.broadcast %cst_17 : f32 to vector<96x1xf32>
    %c0_18 = arith.constant 0 : index
    %c64 = arith.constant 64 : index
    %34 = vector.load %arg5[%c0_18, %c64] : memref<96x65xf32, #tpu.memory_space<vmem>>, vector<96x1xf32>
    tpu.vector_store %arg5[%c0_18, %c64], %33 {strides = array<i32>} : memref<96x65xf32, #tpu.memory_space<vmem>>, vector<96x1xf32>,
    return
  }
}

</mosaic_0001>

<bundles_post_ra>
// kernel: tpu_custom_call.1
= control target key start
LH: loop header
LB: loop body
LE: loop exit
PB: predicated region body
PF: predicated region fallthrough
CT: control target
= control target key end

     0   :  { %vm45_vm0 = vcmask 261120   ;;  %vm207_vm1 = vcmask 523264   ;;  %vm367_vm2 = vcmask 531968   ;;  %s676_s1 = inlined_call_operand.vmem [shape: f32[32,64], index: 1, kind: input, shape index: {}]   ;;  %s677_s0 = inlined_call_operand.vmem [shape: f32[96,32], index: 0, kind: input, shape index: {}]   ;;  %s678_s2 = inlined_call_operand.vmem [shape: f32[1,64], index: 2, kind: input, shape index: {}]   ;;  %s679_s3 = inlined_call_operand.vmem [shape: f32[1,64], index: 3, kind: input, shape index: {}]   ;;  %s680_s4 = inlined_call_operand.vmem [shape: f32[1,64], index: 4, kind: input, shape index: {}]   ;;  %s681_s5 = inlined_call_operand.vmem [shape: f32[96,65], index: 5, kind: output, shape index: {}]  }
   0x1   :  { %v32_v0 = vld [vmem:[%s676_s1] sm:$0xff]  ;;  %v33_v1 = vld [vmem:[%s676_s1 + $0x8] sm:$0xff]  ;;  %v34_v2 = vld [vmem:[%s676_s1 + $0x10] sm:$0xff] }
   0x2   :  { %v441_v3 = vpack.c.bf16 %v33_v1, %v32_v0  ;;  %v35_v4 = vld [vmem:[%s676_s1 + $0x18] sm:$0xff]  ;;  %v20_v5 = vld [vmem:[%s677_s0] sm:$0xff]  ;;  %v26_v7 = vld [vmem:[%s677_s0 + $0x30] sm:$0xff] }
   0x3   :  { %v445_v6 = vpack.c.bf16 %v35_v4, %v34_v2  ;;  %423 = vmatprep.mubr.msk.f32.mxu0 %vm45_vm0, %v20_v5  ;;  %432 = vmatprep.mubr.msk.f32.mxu1 %vm45_vm0, %v26_v7  ;;  %v21_v8 = vld [vmem:[%s677_s0 + $0x8] sm:$0xff]  ;;  %v27_v9 = vld [vmem:[%s677_s0 + $0x38] sm:$0xff]  ;;  %v22_v10 = vld [vmem:[%s677_s0 + $0x10] sm:$0xff] }
   0x4   :  { %442 = vmatprep.subr.bf16.mxu0 %v441_v3  ;;  %449 = vmatprep.subr.bf16.mxu1 %v441_v3  ;;  %v28_v11 = vld [vmem:[%s677_s0 + $0x40] sm:$0xff]  ;;  %v23_v12 = vld [vmem:[%s677_s0 + $0x18] sm:$0xff]  ;;  %v29_v13 = vld [vmem:[%s677_s0 + $0x48] sm:$0xff] }
   0x5   :  { %444 = vmatpush3.bf16.msra.mxu0 %v441_v3  ;;  %451 = vmatpush3.bf16.msra.mxu1 %v441_v3  ;;  %v24_v14 = vld [vmem:[%s677_s0 + $0x20] sm:$0xff]  ;;  %v30_v15 = vld [vmem:[%s677_s0 + $0x50] sm:$0xff]  ;;  %v25_v16 = vld [vmem:[%s677_s0 + $0x28] sm:$0xff] }
   0x6   :  { %446 = vmatprep.subr.bf16.mxu0 %v445_v6  ;;  %450 = vmatprep.subr.bf16.mxu1 %v445_v6  ;;  %v31_v17 = vld [vmem:[%s677_s0 + $0x58] sm:$0xff]  ;;  %v384_v18 = vld [vmem:[%s678_s2] ss:$0 sm:$0xff] }
   0x9   :  { %448 = vmatpush3.bf16.msra.mxu0 %v445_v6  ;;  %452 = vmatpush3.bf16.msra.mxu1 %v445_v6 }
   0xc   :  { %424 = vmatmul.mubr.msk.f32.vlgmr.msra.gmra.mrb[0].mxu0 %vm45_vm0, %v21_v8  ;;  %433 = vmatmul.mubr.msk.f32.vlgmr.msra.gmra.mrb[0].mxu1 %vm45_vm0, %v27_v9 }
   0xd   :  { %426 = vmatprep.mubr.msk.f32.mxu0 %vm45_vm0, %v22_v10  ;;  %435 = vmatprep.mubr.msk.f32.mxu1 %vm45_vm0, %v28_v11 }
  0x10   :  { %427 = vmatmul.mubr.msk.f32.gmra.mrb[2].mxu0 %vm45_vm0, %v23_v12  ;;  %436 = vmatmul.mubr.msk.f32.gmra.mrb[2].mxu1 %vm45_vm0, %v29_v13 }
  0x11   :  { %429 = vmatprep.mubr.msk.f32.mxu0 %vm45_vm0, %v24_v14  ;;  %438 = vmatprep.mubr.msk.f32.mxu1 %vm45_vm0, %v30_v15 }
  0x14   :  { %430 = vmatmul.mubr.msk.f32.gmra.mrb[4].mxu0 %vm45_vm0, %v25_v16  ;;  %439 = vmatmul.mubr.msk.f32.gmra.mrb[4].mxu1 %vm45_vm0, %v31_v17 }
  0xdf   :  { %v425_v19 = vpop.f32.mrb[0].mxu0  ;;  %v434_v20 = vpop.f32.mrb[0].mxu1 }
  0xe0   :  { %v154_v21 = vadd.f32 %v425_v19, %v384_v18  ;;  %v148_v22 = vpop.f32.mrb[1].mxu0  ;;  %v178_v23 = vpop.f32.mrb[1].mxu1  ;;  %v184_v48 = vadd.f32 %v434_v20, %v384_v18 }
  0xe1   :  { %v149_v24 = vadd.f32 %v384_v18, %v148_v22  ;;  %v179_v43 = vadd.f32 %v384_v18, %v178_v23 }
  0xe2   :  { %v209_v25 = vsel %vm207_vm1, %v154_v21, 0.0  ;;  %v221_v53 = vsel %vm207_vm1, %v184_v48, 0.0 }
  0xe3   :  { %v208_v26 = vsel %vm207_vm1, %v149_v24, 0.0  ;;  %v428_v27 = vpop.f32.mrb[2].mxu0  ;;  %v437_v28 = vpop.f32.mrb[2].mxu1  ;;  %v219_v49 = vsel %vm207_vm1, %v179_v43, 0.0 }
  0xe4   :  { %v210_v29 = vadd.f32 %v209_v25, %v208_v26  ;;  %v158_v30 = vpop.f32.mrb[3].mxu0  ;;  %v188_v31 = vpop.f32.mrb[3].mxu1  ;;  %v164_v32 = vadd.f32 %v428_v27, %v384_v18  ;;  %v194_v54 = vadd.f32 %v437_v28, %v384_v18 }
  0xe5   :  { %v159_v33 = vadd.f32 %v384_v18, %v158_v30  ;;  %v189_v50 = vadd.f32 %v384_v18, %v188_v31 }
  0xe6   :  { %v213_v40 = vsel %vm207_vm1, %v164_v32, 0.0  ;;  %v225_v59 = vsel %vm207_vm1, %v194_v54, 0.0 }
  0xe7   :  { %v211_v34 = vsel %vm207_vm1, %v159_v33, 0.0  ;;  %v431_v35 = vpop.f32.mrb[4].mxu0  ;;  %v440_v36 = vpop.f32.mrb[4].mxu1  ;;  %v223_v55 = vsel %vm207_vm1, %v189_v50, 0.0 }
  0xe8   :  { %v212_v37 = vadd.f32 %v211_v34, %v210_v29  ;;  %v168_v38 = vpop.f32.mrb[5].mxu0  ;;  %v198_v39 = vpop.f32.mrb[5].mxu1  ;;  %v174_v41 = vadd.f32 %v431_v35, %v384_v18  ;;  %v204_v60 = vadd.f32 %v440_v36, %v384_v18 }
  0xe9   :  { %v169_v42 = vadd.f32 %v384_v18, %v168_v38  ;;  %v199_v56 = vadd.f32 %v384_v18, %v198_v39 }
  0xea   :  { %v214_v44 = vadd.f32 %v213_v40, %v212_v37  ;;  %v217_v47 = vsel %vm207_vm1, %v174_v41, 0.0  ;;  %v229_v0 = vsel %vm207_vm1, %v204_v60, 0.0 }
  0xeb   :  { %v215_v45 = vsel %vm207_vm1, %v169_v42, 0.0  ;;  %v227_v61 = vsel %vm207_vm1, %v199_v56, 0.0 }
  0xec   :  { %v216_v46 = vadd.f32 %v215_v45, %v214_v44 }
  0xee   :  { %v218_v51 = vadd.f32 %v217_v47, %v216_v46 }
  0xf0   :  { %v220_v52 = vadd.f32 %v219_v49, %v218_v51 }
  0xf2   :  { %v222_v57 = vadd.f32 %v221_v53, %v220_v52 }
  0xf4   :  { %v224_v58 = vadd.f32 %v223_v55, %v222_v57 }
  0xf6   :  { %v226_v62 = vadd.f32 %v225_v59, %v224_v58 }
  0xf8   :  { %v228_v63 = vadd.f32 %v227_v61, %v226_v62 }
  0xfa   :  { %v230_v1 = vadd.f32 %v229_v0, %v228_v63 }
  0xfc   :  { %v231_v2 = vrot.slane %v230_v1, 4 }
  0xfe   :  { %v232_v3 = vadd.f32 %v231_v2, %v230_v1  ;;  %v397_v1 = vld [vmem:[%s679_s3] ss:$0 sm:$0xff] }
 0x100   :  { %v233_v4 = vrot.slane %v232_v3, 2 }
 0x102   :  { %v234_v5 = vadd.f32 %v233_v4, %v232_v3 }
 0x104   :  { %v235_v6 = vrot.slane %v234_v5, 1 }
 0x106   :  { %v236_v7 = vadd.f32 %v235_v6, %v234_v5 }
 0x108   :  { %v238_v8 = vmul.f32 0.010416667, %v236_v7 }
 0x10a   :  { %v239_v9 = vsub.f32 %v149_v24, %v238_v8  ;;  %v240_v10 = vsub.f32 %v154_v21, %v238_v8  ;;  %v241_v11 = vsub.f32 %v159_v33, %v238_v8  ;;  %v242_v12 = vsub.f32 %v164_v32, %v238_v8 }
 0x10b   :  { %v243_v13 = vsub.f32 %v169_v42, %v238_v8  ;;  %v244_v14 = vsub.f32 %v174_v41, %v238_v8  ;;  %v245_v15 = vsub.f32 %v179_v43, %v238_v8  ;;  %v246_v16 = vsub.f32 %v184_v48, %v238_v8 }
 0x10c   :  { %v247_v17 = vsub.f32 %v189_v50, %v238_v8  ;;  %v248_v18 = vsub.f32 %v194_v54, %v238_v8  ;;  %v249_v19 = vsub.f32 %v199_v56, %v238_v8  ;;  %v250_v20 = vsub.f32 %v204_v60, %v238_v8 }
 0x10d   :  { %v251_v22 = vmul.f32 %v239_v9, %v239_v9  ;;  %v252_v23 = vmul.f32 %v240_v10, %v240_v10  ;;  %v253_v25 = vmul.f32 %v241_v11, %v241_v11  ;;  %v254_v26 = vmul.f32 %v242_v12, %v242_v12 }
 0x10e   :  { %v255_v21 = vmul.f32 %v243_v13, %v243_v13  ;;  %v256_v31 = vmul.f32 %v244_v14, %v244_v14  ;;  %v257_v34 = vmul.f32 %v245_v15, %v245_v15  ;;  %v258_v37 = vmul.f32 %v246_v16, %v246_v16 }
 0x10f   :  { %v263_v27 = vsel %vm207_vm1, %v251_v22, 0.0  ;;  %v264_v28 = vsel %vm207_vm1, %v252_v23, 0.0  ;;  %v266_v29 = vsel %vm207_vm1, %v253_v25, 0.0  ;;  %v268_v32 = vsel %vm207_vm1, %v254_v26, 0.0 }
 0x110   :  { %v265_v24 = vadd.f32 %v264_v28, %v263_v27  ;;  %v270_v35 = vsel %vm207_vm1, %v255_v21, 0.0  ;;  %v272_v38 = vsel %vm207_vm1, %v256_v31, 0.0  ;;  %v259_v40 = vmul.f32 %v247_v17, %v247_v17  ;;  %v398_v28 = vld [vmem:[%s680_s4] ss:$0 sm:$0xff] }
 0x111   :  { %v274_v41 = vsel %vm207_vm1, %v257_v34, 0.0  ;;  %v260_v43 = vmul.f32 %v248_v18, %v248_v18  ;;  %v276_v44 = vsel %vm207_vm1, %v258_v37, 0.0  ;;  %v261_v46 = vmul.f32 %v249_v19, %v249_v19 }
 0x112   :  { %v267_v30 = vadd.f32 %v266_v29, %v265_v24  ;;  %v278_v47 = vsel %vm207_vm1, %v259_v40, 0.0  ;;  %v262_v49 = vmul.f32 %v250_v20, %v250_v20 }
 0x113   :  { %v280_v50 = vsel %vm207_vm1, %v260_v43, 0.0  ;;  %v282_v52 = vsel %vm207_vm1, %v261_v46, 0.0 }
 0x114   :  { %v269_v33 = vadd.f32 %v268_v32, %v267_v30  ;;  %v284_v54 = vsel %vm207_vm1, %v262_v49, 0.0 }
 0x116   :  { %v271_v36 = vadd.f32 %v270_v35, %v269_v33 }
 0x118   :  { %v273_v39 = vadd.f32 %v272_v38, %v271_v36 }
 0x11a   :  { %v275_v42 = vadd.f32 %v274_v41, %v273_v39 }
 0x11c   :  { %v277_v45 = vadd.f32 %v276_v44, %v275_v42 }
 0x11e   :  { %v279_v48 = vadd.f32 %v278_v47, %v277_v45 }
 0x120   :  { %v281_v51 = vadd.f32 %v280_v50, %v279_v48 }
 0x122   :  { %v283_v53 = vadd.f32 %v282_v52, %v281_v51  ;;  %v456_v51 = vmov 1.0  }
 0x124   :  { %v285_v55 = vadd.f32 %v284_v54, %v283_v53 }
 0x126   :  { %v286_v56 = vrot.slane %v285_v55, 4 }
 0x128   :  { %v287_v57 = vadd.f32 %v286_v56, %v285_v55 }
 0x12a   :  { %v288_v58 = vrot.slane %v287_v57, 2 }
 0x12c   :  { %v289_v59 = vadd.f32 %v288_v58, %v287_v57 }
 0x12e   :  { %v290_v60 = vrot.slane %v289_v59, 1 }
 0x130   :  { %v291_v61 = vadd.f32 %v290_v60, %v289_v59 }
 0x132   :  { %v292_v62 = vmul.f32 0.010416667, %v291_v61 }
 0x134   :  { %v293_v63 = vadd.f32 1e-05, %v292_v62 }
 0x136   :  { %454 = vrsqrt.f32 %v293_v63 }
 0x140   :  { %v455_v0 = vpop.eup %454 }
 0x141   :  { %v295_v2 = vmul.f32 %v455_v0, %v239_v9  ;;  %v296_v3 = vmul.f32 %v455_v0, %v240_v10  ;;  %v297_v4 = vmul.f32 %v455_v0, %v241_v11  ;;  %v298_v5 = vmul.f32 %v455_v0, %v242_v12 }
 0x142   :  { %v299_v6 = vmul.f32 %v455_v0, %v243_v13  ;;  %v300_v7 = vmul.f32 %v455_v0, %v244_v14  ;;  %v301_v8 = vmul.f32 %v455_v0, %v245_v15  ;;  %v302_v22 = vmul.f32 %v455_v0, %v246_v16 }
 0x143   :  { %v303_v23 = vmul.f32 %v455_v0, %v247_v17  ;;  %v304_v25 = vmul.f32 %v455_v0, %v248_v18  ;;  %v305_v26 = vmul.f32 %v455_v0, %v249_v19  ;;  %v306_v27 = vmul.f32 %v455_v0, %v250_v20 }
 0x144   :  { %v313_v24 = vmul.f32 %v397_v1, %v295_v2  ;;  %v314_v21 = vmul.f32 %v397_v1, %v296_v3  ;;  %v315_v29 = vmul.f32 %v397_v1, %v297_v4  ;;  %v316_v9 = vmul.f32 %v397_v1, %v298_v5 }
 0x145   :  { %v317_v10 = vmul.f32 %v397_v1, %v299_v6  ;;  %v318_v11 = vmul.f32 %v397_v1, %v300_v7  ;;  %v319_v12 = vmul.f32 %v397_v1, %v301_v8  ;;  %v320_v13 = vmul.f32 %v397_v1, %v302_v22 }
 0x146   :  { %v321_v14 = vmul.f32 %v397_v1, %v303_v23  ;;  %v322_v15 = vmul.f32 %v397_v1, %v304_v25  ;;  %v323_v16 = vmul.f32 %v397_v1, %v305_v26  ;;  %v324_v30 = vmul.f32 %v397_v1, %v306_v27 }
 0x147   :  { %v331_v17 = vadd.f32 %v398_v28, %v313_v24  ;;  %v332_v18 = vadd.f32 %v398_v28, %v314_v21  ;;  %v333_v19 = vadd.f32 %v398_v28, %v315_v29  ;;  %v334_v20 = vadd.f32 %v398_v28, %v316_v9 }
 0x148   :  { %v335_v31 = vadd.f32 %v398_v28, %v317_v10  ;;  %v336_v32 = vadd.f32 %v398_v28, %v318_v11  ;;  %v337_v33 = vadd.f32 %v398_v28, %v319_v12  ;;  %v338_v34 = vadd.f32 %v398_v28, %v320_v13 }
 0x149   :  { %v339_v35 = vadd.f32 %v398_v28, %v321_v14  ;;  %v340_v36 = vadd.f32 %v398_v28, %v322_v15  ;;  %v341_v37 = vadd.f32 %v398_v28, %v323_v16  ;;  %v342_v38 = vadd.f32 %v398_v28, %v324_v30 }
 0x14a   :  { %v343_v39 = vmax.f32 %v331_v17, 0.0  ;;  %v344_v40 = vmax.f32 %v332_v18, 0.0  ;;  %v345_v41 = vmax.f32 %v333_v19, 0.0  ;;  %v346_v42 = vmax.f32 %v334_v20, 0.0 }
 0x14b   :  { %v347_v43 = vmax.f32 %v335_v31, 0.0  ;;  %v348_v44 = vmax.f32 %v336_v32, 0.0  ;;  %v349_v45 = vmax.f32 %v337_v33, 0.0  ;;  %v350_v46 = vmax.f32 %v338_v34, 0.0 }
 0x14c   :  { %v351_v47 = vmax.f32 %v339_v35, 0.0  ;;  %v352_v48 = vmax.f32 %v340_v36, 0.0  ;;  %v353_v49 = vmax.f32 %v341_v37, 0.0  ;;  %v354_v50 = vmax.f32 %v342_v38, 0.0  ;;  %355 = vst.msk [vmem:[%s681_s5] sm:$0xff] %vm207_vm1, %v343_v39  ;;  %356 = vst.msk [vmem:[%s681_s5 + $0x8] sm:$0xff] %vm207_vm1, %v344_v40 }
 0x14d   :  { %357 = vst.msk [vmem:[%s681_s5 + $0x10] sm:$0xff] %vm207_vm1, %v345_v41  ;;  %358 = vst.msk [vmem:[%s681_s5 + $0x18] sm:$0xff] %vm207_vm1, %v346_v42 }
 0x14e   :  { %359 = vst.msk [vmem:[%s681_s5 + $0x20] sm:$0xff] %vm207_vm1, %v347_v43  ;;  %360 = vst.msk [vmem:[%s681_s5 + $0x28] sm:$0xff] %vm207_vm1, %v348_v44 }
 0x14f   :  { %361 = vst.msk [vmem:[%s681_s5 + $0x30] sm:$0xff] %vm207_vm1, %v349_v45  ;;  %362 = vst.msk [vmem:[%s681_s5 + $0x38] sm:$0xff] %vm207_vm1, %v350_v46 }
 0x150   :  { %368 = vst.msk [vmem:[%s681_s5] sm:$0xff] %vm367_vm2, %v456_v51  ;;  %369 = vst.msk [vmem:[%s681_s5 + $0x8] sm:$0xff] %vm367_vm2, %v456_v51 }
 0x151   :  { %370 = vst.msk [vmem:[%s681_s5 + $0x10] sm:$0xff] %vm367_vm2, %v456_v51  ;;  %371 = vst.msk [vmem:[%s681_s5 + $0x18] sm:$0xff] %vm367_vm2, %v456_v51 }
 0x152   :  { %363 = vst.msk [vmem:[%s681_s5 + $0x40] sm:$0xff] %vm207_vm1, %v351_v47  ;;  %364 = vst.msk [vmem:[%s681_s5 + $0x48] sm:$0xff] %vm207_vm1, %v352_v48 }
 0x153   :  { %365 = vst.msk [vmem:[%s681_s5 + $0x50] sm:$0xff] %vm207_vm1, %v353_v49  ;;  %366 = vst.msk [vmem:[%s681_s5 + $0x58] sm:$0xff] %vm207_vm1, %v354_v50 }
 0x154   :  { %372 = vst.msk [vmem:[%s681_s5 + $0x20] sm:$0xff] %vm367_vm2, %v456_v51  ;;  %373 = vst.msk [vmem:[%s681_s5 + $0x28] sm:$0xff] %vm367_vm2, %v456_v51 }
 0x155   :  { %374 = vst.msk [vmem:[%s681_s5 + $0x30] sm:$0xff] %vm367_vm2, %v456_v51  ;;  %375 = vst.msk [vmem:[%s681_s5 + $0x38] sm:$0xff] %vm367_vm2, %v456_v51 }
 0x156   :  { %376 = vst.msk [vmem:[%s681_s5 + $0x40] sm:$0xff] %vm367_vm2, %v456_v51  ;;  %377 = vst.msk [vmem:[%s681_s5 + $0x48] sm:$0xff] %vm367_vm2, %v456_v51 }
 0x157   :  { %378 = vst.msk [vmem:[%s681_s5 + $0x50] sm:$0xff] %vm367_vm2, %v456_v51  ;;  %379 = vst.msk [vmem:[%s681_s5 + $0x58] sm:$0xff] %vm367_vm2, %v456_v51 }

</bundles_post_ra>
